<compile_context>
chip_gen: v7x
topology: tpu7x:2x2x1
jax: 0.10.0
libtpu: 0.0.40
codegen_flags: <defaults>
</compile_context>

<pallas_src>
import jax
import jax.numpy as jnp
from jax.experimental import pallas as pl
from jax.experimental.pallas import tpu as pltpu


def _round_up(x: int, m: int) -> int:
    return ((x + m - 1) // m) * m


def _fused_embedding_gather_kernel(idx_ref, table_ref, out_ref):
    """Gather a tile of rows from a concatenated embedding table via one-hot matmul.

    idx_ref:   (tile_bf, 1)     int32   global (offset) row ids for this tile
    table_ref: (C_pad, D_pad)   float32 row-concatenated, zero-padded tables
    out_ref:   (tile_bf, D_pad) float32 gathered embeddings for this tile
    """
    tile_bf = out_ref.shape[0]
    c_pad = table_ref.shape[0]
    ids = idx_ref[...]                                               # (tile_bf, 1)
    col = jax.lax.broadcasted_iota(jnp.int32, (tile_bf, c_pad), 1)   # (tile_bf, C_pad)
    onehot = (col == ids).astype(table_ref.dtype)                    # (tile_bf, C_pad)
    # Bag size is 1, so EmbeddingBag(mode='mean') == this gather. One-hot matmul
    # runs on the MXU; f32 x f32 with f32 accumulation is exact row selection.
    # Out-of-range ids match nothing -> zero row (documented behaviour).
    out_ref[...] = jnp.dot(
        onehot, table_ref[...], preferred_element_type=jnp.float32
    ).astype(out_ref.dtype)


def _fused_embedding_gather(ids_col: jax.Array, table_pad: jax.Array,
                            tile_bf: int) -> jax.Array:
    bf_pad = ids_col.shape[0]
    c_pad, d_pad = table_pad.shape
    grid = (bf_pad // tile_bf,)
    return pl.pallas_call(
        _fused_embedding_gather_kernel,
        out_shape=jax.ShapeDtypeStruct((bf_pad, d_pad), table_pad.dtype),
        grid_spec=pltpu.PrefetchScalarGridSpec(
            num_scalar_prefetch=0,
            grid=grid,
            in_specs=[
                pl.BlockSpec((tile_bf, 1), lambda i: (i, 0)),
                # Constant block index -> table DMA'd once, resident across grid.
                pl.BlockSpec((c_pad, d_pad), lambda i: (0, 0)),
            ],
            out_specs=pl.BlockSpec((tile_bf, d_pad), lambda i: (i, 0)),
        ),
        compiler_params=pltpu.CompilerParams(
            dimension_semantics=("parallel",),
        ),
    )(ids_col, table_pad)


class SparseEmbedding:
    """JAX/Pallas port of the PyTorch SparseEmbedding module."""

    # Max rows of the fused (B*F) axis processed per grid step.
    _MAX_TILE_BF = 512

    def __init__(self, cardinalities: dict, embedding_dim: int, key):
        self.embedding_dim = embedding_dim
        self.cardinalities = dict(cardinalities)
        self.tables = {}
        self.row_offsets = {}

        # nn.EmbeddingBag default init: weights ~ N(0, 1). Deterministic here.
        names = list(self.cardinalities.keys())
        for i, name in enumerate(names):
            subkey = jax.random.fold_in(key, i)
            self.tables[name] = jax.random.normal(
                subkey, (self.cardinalities[name], embedding_dim), dtype=jnp.float32
            )

        # Build the fused, lane-aligned table slab once:
        #   rows  = per-feature tables concatenated (offsets recorded below)
        #   C_pad = next multiple of 128 (one-hot lane / contraction axis)
        #   D_pad = next multiple of 128 (output lane axis)
        total_rows = sum(self.cardinalities[n] for n in names)
        self._c_pad = _round_up(total_rows, 128)
        self._d_pad = _round_up(embedding_dim, 128)
        table_pad = jnp.zeros((self._c_pad, self._d_pad), dtype=jnp.float32)
        row = 0
        for name in names:
            c_f = self.cardinalities[name]
            table_pad = table_pad.at[row:row + c_f, :embedding_dim].set(
                self.tables[name]
            )
            self.row_offsets[name] = row
            row += c_f
        self.table_pad = table_pad

    def __call__(self, inputs: jax.Array, feature_names: list) -> dict:
        """inputs: (batch, num_features) int. Returns {name: (batch, D)} f32."""
        batch, num_features = inputs.shape
        assert num_features == len(feature_names)
        d = self.embedding_dim

        # Cast once; add per-feature row offsets into the concatenated table.
        offsets = jnp.asarray(
            [self.row_offsets[name] for name in feature_names], dtype=jnp.int32
        )
        ids = inputs.astype(jnp.int32) + offsets[None, :]            # (B, F)

        # Feature-major flatten so each feature's rows are contiguous in the
        # fused output.  Pick a sublane-aligned row tile and pad the fused row
        # count to a multiple of it so the grid divides exactly (no masking).
        bf = batch * num_features
        tile_bf = min(self._MAX_TILE_BF, _round_up(bf, 8))
        bf_pad = _round_up(bf, tile_bf)
        ids_col = ids.T.reshape(bf, 1)
        if bf_pad != bf:
            ids_col = jnp.concatenate(
                [ids_col, jnp.zeros((bf_pad - bf, 1), dtype=jnp.int32)], axis=0
            )

        out_pad = _fused_embedding_gather(ids_col, self.table_pad, tile_bf)
        out = out_pad[:bf, :d].reshape(num_features, batch, d)       # (F, B, D)
        return {name: out[f] for f, name in enumerate(feature_names)}


if __name__ == "__main__":
    key = jax.random.PRNGKey(0)
    k_tables, k_ids = jax.random.split(key)

    batch_size = 8
    embedding_dim = 32
    cardinalities = {"user_id": 40, "item_id": 24, "category": 16}
    feature_names = list(cardinalities.keys())

    model = SparseEmbedding(cardinalities, embedding_dim, k_tables)

    # Deterministic integer inputs, each column bounded by its cardinality.
    cols = []
    for i, name in enumerate(feature_names):
        kk = jax.random.fold_in(k_ids, i)
        cols.append(
            jax.random.randint(
                kk, (batch_size,), 0, cardinalities[name], dtype=jnp.int32
            )
        )
    inputs = jnp.stack(cols, axis=1)  # (batch, num_features) int32

    outputs = model(inputs, feature_names)
    outputs = jax.tree_util.tree_map(jax.block_until_ready, outputs)

    # Reference check (plain JAX gather == EmbeddingBag(mean) with bag size 1).
    for i, name in enumerate(feature_names):
        ref = jnp.take(model.tables[name], inputs[:, i], axis=0)
        assert outputs[name].shape == (batch_size, embedding_dim)
        assert jnp.allclose(outputs[name], ref, atol=1e-5), name

    print("KERNEL_OK")
</pallas_src>

<mosaic_0001>
module attributes {stable_mosaic.version = 11 : i64} {
  func.func @_fused_embedding_gather_kernel(%arg0: i32, %arg1: memref<24x1xi32, #tpu.memory_space<vmem>>, %arg2: memref<128x128xf32, #tpu.memory_space<vmem>>, %arg3: memref<24x128xf32, #tpu.memory_space<vmem>>) attributes {dimension_semantics = [#tpu.dimension_semantics<parallel>], iteration_bounds = array<i64: 1>, scalar_prefetch = 0 : i64, scratch_operands = 0 : i64, tpu.core_type = #tpu.core_type<tc>, window_params = [{transform_indices = @transform_0, window_bounds = array<i64: 24, 1>}, {pipeline_mode = #tpu.pipeline_mode<synchronous>, transform_indices = @transform_1, window_bounds = array<i64: 128, 128>}, {transform_indices = @transform_2, window_bounds = array<i64: 24, 128>}]} {
    %c0 = arith.constant 0 : index
    %c0_0 = arith.constant 0 : index
    %0 = vector.load %arg1[%c0, %c0_0] : memref<24x1xi32, #tpu.memory_space<vmem>>, vector<24x1xi32>
    %1 = tpu.iota {dimensions = array<i32: 1>} : vector<24x128xi32>
    %2 = vector.broadcast %0 : vector<24x1xi32> to vector<24x128xi32>
    %3 = arith.cmpi eq, %1, %2 : vector<24x128xi32>
    %4 = arith.extui %3 : vector<24x128xi1> to vector<24x128xi32>
    %5 = arith.sitofp %4 : vector<24x128xi32> to vector<24x128xf32>
    %c0_1 = arith.constant 0 : index
    %c0_2 = arith.constant 0 : index
    %6 = vector.load %arg2[%c0_1, %c0_2] : memref<128x128xf32, #tpu.memory_space<vmem>>, vector<128x128xf32>
    %cst = arith.constant dense<0.000000e+00> : vector<24x128xf32>
    %7 = tpu.matmul %5, %6, %cst {dimension_numbers = #tpu.dot_dimension_numbers<[1], [0], [0], [1], [0, 0, 1, 1], [], []>} : vector<24x128xf32>, vector<128x128xf32>, vector<24x128xf32> -> vector<24x128xf32>
    %c0_3 = arith.constant 0 : index
    %c0_4 = arith.constant 0 : index
    %8 = vector.load %arg3[%c0_3, %c0_4] : memref<24x128xf32, #tpu.memory_space<vmem>>, vector<24x128xf32>
    tpu.vector_store %arg3[%c0_3, %c0_4], %7 {strides = array<i32>} : memref<24x128xf32, #tpu.memory_space<vmem>>, vector<24x128xf32>,
    return
  }
  func.func @transform_0(%arg0: i32) -> (i32, i32) {
    %c0_i32 = arith.constant 0 : i32
    %c0_i32_0 = arith.constant 0 : i32
    return %arg0, %c0_i32 : i32, i32
  }
  func.func @transform_1(%arg0: i32) -> (i32, i32) {
    %c0_i32 = arith.constant 0 : i32
    %c0_i32_0 = arith.constant 0 : i32
    %c0_i32_1 = arith.constant 0 : i32
    return %c0_i32, %c0_i32_0 : i32, i32
  }
  func.func @transform_2(%arg0: i32) -> (i32, i32) {
    %c0_i32 = arith.constant 0 : i32
    %c0_i32_0 = arith.constant 0 : i32
    return %arg0, %c0_i32 : i32, i32
  }
}

</mosaic_0001>

<bundles_post_ra>
// kernel: tpu_custom_call.1
= control target key start
LH: loop header
LB: loop body
LE: loop exit
PB: predicated region body
PF: predicated region fallthrough
CT: control target
= control target key end

     0   :  { %7 = vsyncpa [#allocation3], 0  ;;  %s412_s0 = inlined_call_operand.vmem [shape: s32[24,1], index: 0, kind: input, shape index: {}]   ;;  %s413_s1 = inlined_call_operand.hbm [shape: f32[128,128], index: 1, kind: input, shape index: {}]   ;;  %s414_s2 = inlined_call_operand.hbm [shape: f32[24,128], index: 2, kind: output, shape index: {}]  }
   0x1   :  { %8 = vsyncpa [#allocation4], 0  ;;  %s330_s9 = smov [#allocation2]   ;;  %s282_s13 = scalar_lea.hbm %s413_s1, 2048 }
   0x2   :  { %s16_s10 = sshll.u32 %s330_s9, 4  ;;  %p283_p0 = scmp.ne.s32.totalorder %s413_s1, %s282_s13  ;;  %s17_s10 = int_to_ptr.vmem [resolvable:$true] %s16_s10 }
   0x3   :  { %p286_p1 = scmp.lt.u32.totalorder %s282_s13, %s413_s1 }
   0x5   :  { %p288_p2 = pnand %p286_p1, %p283_p0 }
   0x7   :  { %291 = shalt.err (!%p288_p2)
}
   0x8   :  { %s292_s18 = scalar_lea.vmem %s17_s10, 2048  ;;  %p297_p4 = scmp.lt.s32.totalorder %s17_s10, %s17_s10 }
   0x9   :  { %p293_p3 = scmp.ne.s32.totalorder %s17_s10, %s292_s18  ;;  %p298_p5 = scmp.lt.s32.totalorder %s292_s18, %s292_s18 }
   0xb   :  { %p299_p6 = por %p298_p5, %p297_p4 }
   0xd   :  { %p300_p7 = pnand %p299_p6, %p293_p3 }
   0xf   :  { %303 = shalt.err (!%p300_p7)
}
  0x10   :  { %s331_s19 = smov 128   ;;  %s332_s20 = smov 8  }
  0x11   :  { %22 = dma.hbm_to_vmem [thread:$0]  %s413_s1, 2048, %s17_s10, [#allocation3], %s331_s19, %s331_s19, %s332_s20  }
  0x12   :  { %326 = dma.done.wait [#allocation3], 2048  }
  0x13   :  { %327 = vsyncadd [#allocation3], 4294965248  ;;  %v333_v0 = vmov 0   ;;  %v334_v1 = vmov 0.0|0.0   ;;  %v27_v2 = vld [vmem:[%s412_s0 + $0x8] sm:$0xff]  ;;  %v28_v3 = vld [vmem:[%s412_s0 + $0x10] sm:$0xff]  ;;  %v29_v30 = vlaneseq }
  0x14   :  { %280 = vset.pattern.permute.xlu0 %v333_v0  ;;  %281 = vset.pattern.permute.xlu1 %v333_v0  ;;  %v49_v4 = vld [vmem:[#allocation2] sm:$0xff]  ;;  %v50_v5 = vld [vmem:[#allocation2 + $0x8] sm:$0xff]  ;;  %v51_v6 = vld [vmem:[#allocation2 + $0x10] sm:$0xff]  ;;  %vm335_vm0 = vmmov 0   ;;  %v336_v10 = vmov 0.0   ;;  %v337_v34 = vmov 1.0  }
  0x15   :  { %255 = vmatprep.subr.bf16.mxu1 %v334_v1  ;;  %231 = vmatprep.subr.bf16.mxu0 %v334_v1  ;;  %v26_v7 = vld [vmem:[%s412_s0] sm:$0xff]  ;;  %v232_v8 = vpack.c.bf16 %v50_v5, %v49_v4  ;;  %v52_v9 = vld [vmem:[#allocation2 + $0x18] sm:$0xff]  ;;  %v54_v13 = vld [vmem:[#allocation2 + $0x28] sm:$0xff]  ;;  %v30_v31 = vand.u32 127, %v29_v30  ;;  %s338_s0 = smov [#allocation5]  }
  0x16   :  { %35 = vperm.xlu0 %280, %v27_v2   ;;  %38 = vperm.xlu1 %281, %v28_v3   ;;  %v235_v11 = vpack.c.bf16 %v52_v9, %v51_v6  ;;  %v53_v12 = vld [vmem:[#allocation2 + $0x20] sm:$0xff]  ;;  %v55_v15 = vld [vmem:[#allocation2 + $0x30] sm:$0xff]  ;;  %v56_v16 = vld [vmem:[#allocation2 + $0x38] sm:$0xff]  ;;  %s153_s28 = sshll.u32 %s338_s0, 4  ;;  %s154_s28 = int_to_ptr.vmem [resolvable:$true] %s153_s28 }
  0x17   :  { %225 = vmatprep.mubr.msk.f32.mxu1 %vm335_vm0, %v336_v10  ;;  %222 = vmatprep.mubr.msk.f32.mxu0 %vm335_vm0, %v336_v10  ;;  %v238_v14 = vpack.c.bf16 %v54_v13, %v53_v12  ;;  %v241_v17 = vpack.c.bf16 %v56_v16, %v55_v15  ;;  %v57_v18 = vld [vmem:[#allocation2 + $0x40] sm:$0xff]  ;;  %v58_v19 = vld [vmem:[#allocation2 + $0x48] sm:$0xff]  ;;  %v59_v21 = vld [vmem:[#allocation2 + $0x50] sm:$0xff]  ;;  %s304_s29 = scalar_lea.vmem %s154_s28, 384  ;;  %p309_p9 = scmp.lt.s32.totalorder %s154_s28, %s154_s28 }
  0x18   :  { %263 = vmatpush3.bf16.msra.mxu1 %v232_v8  ;;  %233 = vmatpush3.bf16.msra.mxu0 %v232_v8  ;;  %v244_v20 = vpack.c.bf16 %v58_v19, %v57_v18  ;;  %v60_v22 = vld [vmem:[#allocation2 + $0x58] sm:$0xff]  ;;  %v61_v24 = vld [vmem:[#allocation2 + $0x60] sm:$0xff]  ;;  %v62_v25 = vld [vmem:[#allocation2 + $0x68] sm:$0xff]  ;;  %p305_p8 = scmp.ne.s32.totalorder %s154_s28, %s304_s29  ;;  %p310_p10 = scmp.lt.s32.totalorder %s304_s29, %s304_s29 }
  0x19   :  { %256 = vmatprep.subr.bf16.mxu1 %v334_v1  ;;  %234 = vmatprep.subr.bf16.mxu0 %v334_v1  ;;  %v247_v23 = vpack.c.bf16 %v60_v22, %v59_v21  ;;  %v250_v26 = vpack.c.bf16 %v62_v25, %v61_v24  ;;  %v63_v27 = vld [vmem:[#allocation2 + $0x70] sm:$0xff]  ;;  %v64_v28 = vld [vmem:[#allocation2 + $0x78] sm:$0xff] }
  0x1a   :  { %32 = vperm.xlu0 %280, %v26_v7   ;;  %v253_v29 = vpack.c.bf16 %v64_v28, %v63_v27  ;;  %p311_p11 = por %p310_p10, %p309_p9 }
  0x1c   :  { %264 = vmatpush3.bf16.msra.mxu1 %v235_v11  ;;  %236 = vmatpush3.bf16.msra.mxu0 %v235_v11  ;;  %p312_p12 = pnand %p311_p11, %p305_p8 }
  0x1d   :  { %257 = vmatprep.subr.bf16.mxu1 %v334_v1  ;;  %237 = vmatprep.subr.bf16.mxu0 %v334_v1 }
  0x20   :  { %265 = vmatpush3.bf16.msra.mxu1 %v238_v14  ;;  %239 = vmatpush3.bf16.msra.mxu0 %v238_v14 }
  0x21   :  { %258 = vmatprep.subr.bf16.mxu1 %v334_v1  ;;  %240 = vmatprep.subr.bf16.mxu0 %v334_v1 }
  0x24   :  { %266 = vmatpush3.bf16.msra.mxu1 %v241_v17  ;;  %242 = vmatpush3.bf16.msra.mxu0 %v241_v17 }
  0x25   :  { %259 = vmatprep.subr.bf16.mxu1 %v334_v1  ;;  %243 = vmatprep.subr.bf16.mxu0 %v334_v1 }
  0x28   :  { %267 = vmatpush3.bf16.msra.mxu1 %v244_v20  ;;  %245 = vmatpush3.bf16.msra.mxu0 %v244_v20 }
  0x29   :  { %260 = vmatprep.subr.bf16.mxu1 %v334_v1  ;;  %246 = vmatprep.subr.bf16.mxu0 %v334_v1 }
  0x2c   :  { %268 = vmatpush3.bf16.msra.mxu1 %v247_v23  ;;  %248 = vmatpush3.bf16.msra.mxu0 %v247_v23 }
  0x2d   :  { %261 = vmatprep.subr.bf16.mxu1 %v334_v1  ;;  %249 = vmatprep.subr.bf16.mxu0 %v334_v1 }
  0x30   :  { %269 = vmatpush3.bf16.msra.mxu1 %v250_v26  ;;  %251 = vmatpush3.bf16.msra.mxu0 %v250_v26 }
  0x31   :  { %262 = vmatprep.subr.bf16.mxu1 %v334_v1  ;;  %252 = vmatprep.subr.bf16.mxu0 %v334_v1 }
  0x34   :  { %270 = vmatpush3.bf16.msra.mxu1 %v253_v29  ;;  %254 = vmatpush3.bf16.msra.mxu0 %v253_v29 }
  0x95   :  { %v36_v32 = vpop.permute.xlu0 %35  ;;  %v39_v33 = vpop.permute.xlu1 %38 }
  0x96   :  { %vm41_vm1 = vcmp.eq.s32.totalorder %v30_v31, %v36_v32  ;;  %vm42_vm2 = vcmp.eq.s32.totalorder %v30_v31, %v39_v33 }
  0x97   :  { %226 = vmatmul.mubr.msk.f32.vlgmr.msra.gmra.mrb[0].mxu1 %vm41_vm1, %v337_v34 }
  0x98   :  { %228 = vmatprep.mubr.msk.f32.mxu1 %vm335_vm0, %v336_v10 }
  0x99   :  { %v33_v35 = vpop.permute.xlu0 %32 }
  0x9a   :  { %vm40_vm3 = vcmp.eq.s32.totalorder %v30_v31, %v33_v35 }
  0x9b   :  { %223 = vmatmul.mubr.msk.f32.vlgmr.msra.gmra.mrb[0].mxu0 %vm40_vm3, %v337_v34  ;;  %229 = vmatmul.mubr.msk.f32.gmra.mrb[2].mxu1 %vm42_vm2, %v337_v34 }
 0x16a   :  { %v136_v36 = vpop.f32.mrb[0].mxu1 }
 0x16b   :  { %146 = vst [vmem:[#allocation5 + $0x8] sm:$0xff] %v136_v36  ;;  %v227_v37 = vpop.f32.mrb[1].mxu1 }
 0x16e   :  { %v131_v38 = vpop.f32.mrb[0].mxu0  ;;  %v141_v39 = vpop.f32.mrb[2].mxu1 }
 0x16f   :  { %145 = vst [vmem:[#allocation5] sm:$0xff] %v131_v38  ;;  %147 = vst [vmem:[#allocation5 + $0x10] sm:$0xff] %v141_v39  ;;  %v224_v40 = vpop.f32.mrb[1].mxu0  ;;  %v230_v41 = vpop.f32.mrb[3].mxu1 }
 0x170   :  { %315 = shalt.err (!%p312_p12)
}
 0x171   :  { %s316_s4 = scalar_lea.hbm %s414_s2, 384 }
 0x172   :  { %p317_p13 = scmp.ne.s32.totalorder %s414_s2, %s316_s4  ;;  %p320_p0 = scmp.lt.u32.totalorder %s316_s4, %s414_s2 }
 0x174   :  { %p322_p1 = pnand %p320_p0, %p317_p13 }
 0x176   :  { %325 = shalt.err (!%p322_p1)
}
 0x177   :  { %159 = dma.vmem_to_hbm [thread:$0]  %s154_s28, 384, %s414_s2, [#allocation4], %s331_s19, %s331_s19, %s332_s20  }
 0x178   :  { %328 = dma.done.wait [#allocation4], 384  }
 0x179   :  { %329 = vsyncadd [#allocation4], 4294966912 }
 0x17a   :  { %163 = vsyncpa [#allocation3], 1 }
 0x17b   :  { %164 = vsyncpa [#allocation4], 1 }

</bundles_post_ra>
